<compile_context>
chip_gen: v7x
topology: tpu7x:2x2x1
jax: 0.10.0
libtpu: 0.0.40
codegen_flags: <defaults>
</compile_context>

<pallas_src>
import jax
import jax.numpy as jnp
from jax.experimental import pallas as pl
from jax.experimental.pallas import tpu as pltpu


def _round_up(x, m):
    return ((x + m - 1) // m) * m


# --------------------------------------------------------------------------
# Kernel: one grid step == one SAGE layer; h lives in a bf16 VMEM scratch.
# --------------------------------------------------------------------------
def _fused_sage_kernel(a_ref, dinv_ref, ws_ref, wn_ref, b_ref, x_ref,
                       o_ref, h_ref):
    i = pl.program_id(0)
    last = pl.num_programs(0) - 1

    @pl.when(i == 0)
    def _():
        h_ref[...] = x_ref[...]                      # bf16 (N_PAD, D_PAD)

    h = h_ref[...]                                   # bf16 carried activation

    # Mean neighbor aggregation: bf16 0/1 adjacency on the MXU (exact),
    # f32 accumulation, then f32 per-row 1/in-degree scale on the VPU.
    h_neigh = jnp.dot(a_ref[0], h, preferred_element_type=jnp.float32)
    h_neigh = h_neigh * dinv_ref[0]                  # (N_PAD, 1) f32 scale

    # SAGEConv projection: two K=D_PAD bf16 matmuls, f32 accumulation
    # (no concat intermediate).  Dst nodes are the leading rows of h.
    out = jnp.dot(h, ws_ref[0], preferred_element_type=jnp.float32)
    out = out + jnp.dot(h_neigh.astype(jnp.bfloat16), wn_ref[0],
                        preferred_element_type=jnp.float32)
    out = out + b_ref[0]                             # (1, D_PAD) f32 bias

    # ReLU only after the middle layers (matches Model.forward).
    is_middle = jnp.logical_and(i > 0, i < last)

    @pl.when(is_middle)
    def _():
        h_ref[...] = jnp.maximum(out, 0.0).astype(jnp.bfloat16)

    @pl.when(jnp.logical_not(is_middle))
    def _():
        h_ref[...] = out.astype(jnp.bfloat16)

    @pl.when(i == last)
    def _():
        o_ref[...] = out                             # f32, no ReLU on last layer


def fused_sage_forward(a_stack, dinv_stack, ws_stack, wn_stack, b_stack, x_pad):
    num_layers, n_pad, _ = a_stack.shape
    d_pad = x_pad.shape[1]

    grid_spec = pltpu.PrefetchScalarGridSpec(
        num_scalar_prefetch=0,
        grid=(num_layers,),
        in_specs=[
            pl.BlockSpec((1, n_pad, n_pad), lambda i: (i, 0, 0)),  # A[i]   bf16
            pl.BlockSpec((1, n_pad, 1),     lambda i: (i, 0, 0)),  # 1/deg  f32
            pl.BlockSpec((1, d_pad, d_pad), lambda i: (i, 0, 0)),  # W_self bf16
            pl.BlockSpec((1, d_pad, d_pad), lambda i: (i, 0, 0)),  # W_neigh bf16
            pl.BlockSpec((1, 1, d_pad),     lambda i: (i, 0, 0)),  # bias   f32
            pl.BlockSpec((n_pad, d_pad),    lambda i: (0, 0)),     # x      bf16
        ],
        out_specs=pl.BlockSpec((n_pad, d_pad), lambda i: (0, 0)),  # resident
        scratch_shapes=[pltpu.VMEM((n_pad, d_pad), jnp.bfloat16)],  # carried h
    )
    return pl.pallas_call(
        _fused_sage_kernel,
        out_shape=jax.ShapeDtypeStruct((n_pad, d_pad), jnp.float32),
        grid_spec=grid_spec,
        compiler_params=pltpu.CompilerParams(
            dimension_semantics=("arbitrary",)),   # layer axis is sequential
    )(a_stack, dinv_stack, ws_stack, wn_stack, b_stack, x_pad)
    # TODO(synk): at production fanouts (n_src ~ 16k) the dense-A path does
    # not scale: add a (dst-tile "parallel", src-K-tile "arbitrary") grid over
    # the aggregation with an f32 accumulator scratch (megacore on v7x), or
    # switch to gather/segment-sum aggregation driven by scalar-prefetched
    # neighbor-index lists so traffic scales with nnz rather than N^2.


# --------------------------------------------------------------------------
# Host-side parameter / input construction and packing.
# --------------------------------------------------------------------------
def init_params(key, in_feats, h_feats, num_classes, num_layers):
    """Deterministic init matching the SAGEConv parameter shapes."""
    dims = [in_feats] + [h_feats] * (num_layers - 1) + [num_classes]
    params = []
    for i in range(num_layers):
        key, k1, k2, k3 = jax.random.split(key, 4)
        d_in, d_out = dims[i], dims[i + 1]
        scale = 1.0 / jnp.sqrt(float(d_in))
        w_self = jax.random.uniform(k1, (d_in, d_out), jnp.float32, -scale, scale)
        w_neigh = jax.random.uniform(k2, (d_in, d_out), jnp.float32, -scale, scale)
        b = jax.random.uniform(k3, (1, d_out), jnp.float32, -scale, scale)
        params.append((w_self, w_neigh, b))
    return params


def make_adjs(key, counts):
    """Synthetic neighbor-sampled blocks as UNNORMALIZED 0/1 adjacencies.

    dst node d == src node d (DGL block convention); the self edge guarantees
    in-degree >= 1 so the mean normalization is well defined.
    """
    adjs = []
    for i in range(len(counts) - 1):
        key, k = jax.random.split(key)
        n_dst, n_src = counts[i + 1], counts[i]
        adj = (jax.random.uniform(k, (n_dst, n_src)) < 0.3).astype(jnp.float32)
        adj = adj.at[jnp.arange(n_dst), jnp.arange(n_dst)].set(1.0)
        adjs.append(adj)
    return adjs


def pack_inputs(adjs, x, params, *, n_pad, d_pad):
    """Pad everything to lane/sublane-dense slabs and stack per-layer tensors."""
    num_layers = len(adjs)
    a_stack = jnp.zeros((num_layers, n_pad, n_pad), jnp.float32)
    dinv_stack = jnp.zeros((num_layers, n_pad, 1), jnp.float32)
    for i, adj in enumerate(adjs):
        nd, ns = adj.shape
        a_stack = a_stack.at[i, :nd, :ns].set(adj)
        dinv_stack = dinv_stack.at[i, :nd, :].set(
            1.0 / adj.sum(axis=1, keepdims=True))

    ws_stack = jnp.zeros((num_layers, d_pad, d_pad), jnp.float32)
    wn_stack = jnp.zeros((num_layers, d_pad, d_pad), jnp.float32)
    b_stack = jnp.zeros((num_layers, 1, d_pad), jnp.float32)
    for i, (w_self, w_neigh, b) in enumerate(params):
        d_in, d_out = w_self.shape
        ws_stack = ws_stack.at[i, :d_in, :d_out].set(w_self)
        wn_stack = wn_stack.at[i, :d_in, :d_out].set(w_neigh)
        b_stack = b_stack.at[i, 0, :d_out].set(b[0])

    x_pad = jnp.zeros((n_pad, d_pad), jnp.float32)
    x_pad = x_pad.at[:x.shape[0], :x.shape[1]].set(x)

    # bf16 MXU operands: 0/1 adjacency (exact), weights, activations.
    # 1/deg row scale and bias stay f32.
    return (a_stack.astype(jnp.bfloat16),
            dinv_stack,
            ws_stack.astype(jnp.bfloat16),
            wn_stack.astype(jnp.bfloat16),
            b_stack,
            x_pad.astype(jnp.bfloat16))


def reference_forward(adjs, x, params, num_layers):
    """Pure-jnp mirror of Model.forward with the kernel's bf16 numerics."""
    h = x.astype(jnp.bfloat16)
    out = None
    for i in range(num_layers):
        adj = adjs[i]
        n_dst = adj.shape[0]
        w_self, w_neigh, b = params[i]
        dinv = 1.0 / adj.sum(axis=1, keepdims=True)
        h_neigh = jnp.dot(adj.astype(jnp.bfloat16), h,
                          preferred_element_type=jnp.float32) * dinv
        out = (jnp.dot(h[:n_dst], w_self.astype(jnp.bfloat16),
                       preferred_element_type=jnp.float32)
               + jnp.dot(h_neigh.astype(jnp.bfloat16),
                         w_neigh.astype(jnp.bfloat16),
                         preferred_element_type=jnp.float32)
               + b)
        if 0 < i < num_layers - 1:
            out = jnp.maximum(out, 0.0)
        h = out.astype(jnp.bfloat16)
    return out


if __name__ == "__main__":
    num_layers = 6
    in_feats, h_feats, num_classes = 16, 32, 8
    # node counts per hop: src of layer i = counts[i], dst = counts[i+1]
    counts = [64, 56, 48, 40, 32, 24, 16]

    key = jax.random.PRNGKey(0)
    kx, kg, kp = jax.random.split(key, 3)
    x = jax.random.normal(kx, (counts[0], in_feats), jnp.float32)
    adjs = make_adjs(kg, counts)
    params = init_params(kp, in_feats, h_feats, num_classes, num_layers)

    d_pad = _round_up(max(in_feats, h_feats, num_classes), 128)   # -> 128 lanes
    n_pad = _round_up(max(counts), 8)                             # -> 64 sublanes

    packed = pack_inputs(adjs, x, params, n_pad=n_pad, d_pad=d_pad)

    out_pad = fused_sage_forward(*packed)
    out_pad = jax.block_until_ready(out_pad)
    out = out_pad[:counts[-1], :num_classes]

    assert out.shape == (counts[-1], num_classes), out.shape
    assert out.dtype == jnp.float32

    ref = reference_forward(adjs, x, params, num_layers)
    err = float(jnp.max(jnp.abs(out - ref)))
    assert err < 5e-2, f"max abs err vs reference: {err}"
    print("KERNEL_OK")
</pallas_src>

<mosaic_0001>
module attributes {stable_mosaic.version = 11 : i64} {
  func.func @_fused_sage_kernel(%arg0: i32, %arg1: memref<1x64x64xbf16, #tpu.memory_space<vmem>>, %arg2: memref<1x64x1xf32, #tpu.memory_space<vmem>>, %arg3: memref<1x128x128xbf16, #tpu.memory_space<vmem>>, %arg4: memref<1x128x128xbf16, #tpu.memory_space<vmem>>, %arg5: memref<1x1x128xf32, #tpu.memory_space<vmem>>, %arg6: memref<64x128xbf16, #tpu.memory_space<vmem>>, %arg7: memref<64x128xf32, #tpu.memory_space<vmem>>, %arg8: memref<64x128xbf16, #tpu.memory_space<vmem>>) attributes {dimension_semantics = [#tpu.dimension_semantics<arbitrary>], iteration_bounds = array<i64: 6>, scalar_prefetch = 0 : i64, scratch_operands = 1 : i64, tpu.core_type = #tpu.core_type<tc>, window_params = [{transform_indices = @transform_0, window_bounds = array<i64: 1, 64, 64>}, {transform_indices = @transform_1, window_bounds = array<i64: 1, 64, 1>}, {transform_indices = @transform_2, window_bounds = array<i64: 1, 128, 128>}, {transform_indices = @transform_3, window_bounds = array<i64: 1, 128, 128>}, {transform_indices = @transform_4, window_bounds = array<i64: 1, 1, 128>}, {pipeline_mode = #tpu.pipeline_mode<synchronous>, transform_indices = @transform_5, window_bounds = array<i64: 64, 128>}, {pipeline_mode = #tpu.pipeline_mode<synchronous>, transform_indices = @transform_6, window_bounds = array<i64: 64, 128>}]} {
    %c0_i32 = arith.constant 0 : i32
    %0 = arith.cmpi eq, %arg0, %c0_i32 : i32
    %1 = arith.extui %0 : i1 to i32
    %c0_i32_0 = arith.constant 0 : i32
    %2 = arith.cmpi ne, %1, %c0_i32_0 : i32
    scf.if %2 {
      %c0_24 = arith.constant 0 : index
      %c0_25 = arith.constant 0 : index
      %34 = vector.load %arg6[%c0_24, %c0_25] : memref<64x128xbf16, #tpu.memory_space<vmem>>, vector<64x128xbf16>
      %c0_26 = arith.constant 0 : index
      %c0_27 = arith.constant 0 : index
      %35 = vector.load %arg8[%c0_26, %c0_27] : memref<64x128xbf16, #tpu.memory_space<vmem>>, vector<64x128xbf16>
      tpu.vector_store %arg8[%c0_26, %c0_27], %34 {strides = array<i32>} : memref<64x128xbf16, #tpu.memory_space<vmem>>, vector<64x128xbf16>,
    } else {
    }
    %c0 = arith.constant 0 : index
    %c0_1 = arith.constant 0 : index
    %3 = vector.load %arg8[%c0, %c0_1] : memref<64x128xbf16, #tpu.memory_space<vmem>>, vector<64x128xbf16>
    %c0_2 = arith.constant 0 : index
    %c0_3 = arith.constant 0 : index
    %c0_4 = arith.constant 0 : index
    %4 = vector.load %arg1[%c0_2, %c0_3, %c0_4] : memref<1x64x64xbf16, #tpu.memory_space<vmem>>, vector<1x64x64xbf16>
    %5 = vector.shape_cast %4 : vector<1x64x64xbf16> to vector<64x64xbf16>
    %cst = arith.constant dense<0.000000e+00> : vector<64x128xf32>
    %6 = tpu.matmul %5, %3, %cst {dimension_numbers = #tpu.dot_dimension_numbers<[1], [0], [0], [1], [0, 0, 1, 1], [], []>} : vector<64x64xbf16>, vector<64x128xbf16>, vector<64x128xf32> -> vector<64x128xf32>
    %c0_5 = arith.constant 0 : index
    %c0_6 = arith.constant 0 : index
    %c0_7 = arith.constant 0 : index
    %7 = vector.load %arg2[%c0_5, %c0_6, %c0_7] : memref<1x64x1xf32, #tpu.memory_space<vmem>>, vector<1x64x1xf32>
    %8 = vector.shape_cast %7 : vector<1x64x1xf32> to vector<64x1xf32>
    %9 = vector.broadcast %8 : vector<64x1xf32> to vector<64x128xf32>
    %10 = arith.mulf %6, %9 : vector<64x128xf32>
    %c0_8 = arith.constant 0 : index
    %c0_9 = arith.constant 0 : index
    %c0_10 = arith.constant 0 : index
    %11 = vector.load %arg3[%c0_8, %c0_9, %c0_10] : memref<1x128x128xbf16, #tpu.memory_space<vmem>>, vector<1x128x128xbf16>
    %12 = vector.shape_cast %11 : vector<1x128x128xbf16> to vector<128x128xbf16>
    %cst_11 = arith.constant dense<0.000000e+00> : vector<64x128xf32>
    %13 = tpu.matmul %3, %12, %cst_11 {dimension_numbers = #tpu.dot_dimension_numbers<[1], [0], [0], [1], [0, 0, 1, 1], [], []>} : vector<64x128xbf16>, vector<128x128xbf16>, vector<64x128xf32> -> vector<64x128xf32>
    %14 = arith.truncf %10 : vector<64x128xf32> to vector<64x128xbf16>
    %c0_12 = arith.constant 0 : index
    %c0_13 = arith.constant 0 : index
    %c0_14 = arith.constant 0 : index
    %15 = vector.load %arg4[%c0_12, %c0_13, %c0_14] : memref<1x128x128xbf16, #tpu.memory_space<vmem>>, vector<1x128x128xbf16>
    %16 = vector.shape_cast %15 : vector<1x128x128xbf16> to vector<128x128xbf16>
    %cst_15 = arith.constant dense<0.000000e+00> : vector<64x128xf32>
    %17 = tpu.matmul %14, %16, %cst_15 {dimension_numbers = #tpu.dot_dimension_numbers<[1], [0], [0], [1], [0, 0, 1, 1], [], []>} : vector<64x128xbf16>, vector<128x128xbf16>, vector<64x128xf32> -> vector<64x128xf32>
    %18 = arith.addf %13, %17 : vector<64x128xf32>
    %c0_16 = arith.constant 0 : index
    %c0_17 = arith.constant 0 : index
    %c0_18 = arith.constant 0 : index
    %19 = vector.load %arg5[%c0_16, %c0_17, %c0_18] : memref<1x1x128xf32, #tpu.memory_space<vmem>>, vector<1x1x128xf32>
    %20 = vector.shape_cast %19 : vector<1x1x128xf32> to vector<1x128xf32>
    %21 = vector.broadcast %20 : vector<1x128xf32> to vector<64x128xf32>
    %22 = arith.addf %18, %21 : vector<64x128xf32>
    %c0_i32_19 = arith.constant 0 : i32
    %23 = arith.cmpi sgt, %arg0, %c0_i32_19 : i32
    %c5_i32 = arith.constant 5 : i32
    %24 = arith.cmpi slt, %arg0, %c5_i32 : i32
    %25 = arith.andi %23, %24 : i1
    %26 = arith.extui %25 : i1 to i32
    %c0_i32_20 = arith.constant 0 : i32
    %27 = arith.cmpi ne, %26, %c0_i32_20 : i32
    scf.if %27 {
      %cst_24 = arith.constant 0.000000e+00 : f32
      %34 = vector.broadcast %cst_24 : f32 to vector<64x128xf32>
      %35 = arith.maximumf %22, %34 : vector<64x128xf32>
      %36 = arith.truncf %35 : vector<64x128xf32> to vector<64x128xbf16>
      %c0_25 = arith.constant 0 : index
      %c0_26 = arith.constant 0 : index
      %37 = vector.load %arg8[%c0_25, %c0_26] : memref<64x128xbf16, #tpu.memory_space<vmem>>, vector<64x128xbf16>
      tpu.vector_store %arg8[%c0_25, %c0_26], %36 {strides = array<i32>} : memref<64x128xbf16, #tpu.memory_space<vmem>>, vector<64x128xbf16>,
    } else {
    }
    %true = arith.constant true
    %28 = arith.xori %25, %true : i1
    %29 = arith.extui %28 : i1 to i32
    %c0_i32_21 = arith.constant 0 : i32
    %30 = arith.cmpi ne, %29, %c0_i32_21 : i32
    scf.if %30 {
      %34 = arith.truncf %22 : vector<64x128xf32> to vector<64x128xbf16>
      %c0_24 = arith.constant 0 : index
      %c0_25 = arith.constant 0 : index
      %35 = vector.load %arg8[%c0_24, %c0_25] : memref<64x128xbf16, #tpu.memory_space<vmem>>, vector<64x128xbf16>
      tpu.vector_store %arg8[%c0_24, %c0_25], %34 {strides = array<i32>} : memref<64x128xbf16, #tpu.memory_space<vmem>>, vector<64x128xbf16>,
    } else {
    }
    %c5_i32_22 = arith.constant 5 : i32
    %31 = arith.cmpi eq, %arg0, %c5_i32_22 : i32
    %32 = arith.extui %31 : i1 to i32
    %c0_i32_23 = arith.constant 0 : i32
    %33 = arith.cmpi ne, %32, %c0_i32_23 : i32
    scf.if %33 {
      %c0_24 = arith.constant 0 : index
      %c0_25 = arith.constant 0 : index
      %34 = vector.load %arg7[%c0_24, %c0_25] : memref<64x128xf32, #tpu.memory_space<vmem>>, vector<64x128xf32>
      tpu.vector_store %arg7[%c0_24, %c0_25], %22 {strides = array<i32>} : memref<64x128xf32, #tpu.memory_space<vmem>>, vector<64x128xf32>,
    } else {
    }
    return
  }
  func.func @transform_0(%arg0: i32) -> (i32, i32, i32) {
    %c0_i32 = arith.constant 0 : i32
    %c0_i32_0 = arith.constant 0 : i32
    %c0_i32_1 = arith.constant 0 : i32
    return %arg0, %c0_i32, %c0_i32_0 : i32, i32, i32
  }
  func.func @transform_1(%arg0: i32) -> (i32, i32, i32) {
    %c0_i32 = arith.constant 0 : i32
    %c0_i32_0 = arith.constant 0 : i32
    %c0_i32_1 = arith.constant 0 : i32
    return %arg0, %c0_i32, %c0_i32_0 : i32, i32, i32
  }
  func.func @transform_2(%arg0: i32) -> (i32, i32, i32) {
    %c0_i32 = arith.constant 0 : i32
    %c0_i32_0 = arith.constant 0 : i32
    %c0_i32_1 = arith.constant 0 : i32
    return %arg0, %c0_i32, %c0_i32_0 : i32, i32, i32
  }
  func.func @transform_3(%arg0: i32) -> (i32, i32, i32) {
    %c0_i32 = arith.constant 0 : i32
    %c0_i32_0 = arith.constant 0 : i32
    %c0_i32_1 = arith.constant 0 : i32
    return %arg0, %c0_i32, %c0_i32_0 : i32, i32, i32
  }
  func.func @transform_4(%arg0: i32) -> (i32, i32, i32) {
    %c0_i32 = arith.constant 0 : i32
    %c0_i32_0 = arith.constant 0 : i32
    %c0_i32_1 = arith.constant 0 : i32
    return %arg0, %c0_i32, %c0_i32_0 : i32, i32, i32
  }
  func.func @transform_5(%arg0: i32) -> (i32, i32) {
    %c0_i32 = arith.constant 0 : i32
    %c0_i32_0 = arith.constant 0 : i32
    %c0_i32_1 = arith.constant 0 : i32
    return %c0_i32, %c0_i32_0 : i32, i32
  }
  func.func @transform_6(%arg0: i32) -> (i32, i32) {
    %c0_i32 = arith.constant 0 : i32
    %c0_i32_0 = arith.constant 0 : i32
    %c0_i32_1 = arith.constant 0 : i32
    return %c0_i32, %c0_i32_0 : i32, i32
  }
}

</mosaic_0001>

<bundles_post_ra>
// kernel: tpu_custom_call.1
= control target key start
LH: loop header
LB: loop body
LE: loop exit
PB: predicated region body
PF: predicated region fallthrough
CT: control target
= control target key end

     0   :  { %s1788_s0 = inlined_call_operand.hbm [shape: bf16[6,64,64], index: 0, kind: input, shape index: {}]   ;;  %s1789_s1 = inlined_call_operand.vmem [shape: f32[6,64,1], index: 1, kind: input, shape index: {}]   ;;  %s1790_s2 = inlined_call_operand.vmem [shape: bf16[6,128,128], index: 2, kind: input, shape index: {}]   ;;  %s1791_s3 = inlined_call_operand.hbm [shape: bf16[6,128,128], index: 3, kind: input, shape index: {}]   ;;  %s1792_s4 = inlined_call_operand.vmem [shape: f32[6,1,128], index: 4, kind: input, shape index: {}]   ;;  %s1793_s5 = inlined_call_operand.hbm [shape: bf16[64,128], index: 5, kind: input, shape index: {}]   ;;  %s1794_s6 = inlined_call_operand.hbm [shape: f32[64,128], index: 6, kind: output, shape index: {}]  }
   0x1   :  { %1798 = sst [smem:[#allocation14_spill]] %s1788_s0 }
   0x2   :  { %11 = vsyncpa [#allocation4], 0 }
   0x3   :  { %13 = vsyncpa [#allocation4 + $0x1], 0 }
   0x4   :  { %14 = vsyncpa [#allocation7], 0 }
   0x5   :  { %16 = vsyncpa [#allocation7 + $0x1], 0 }
   0x6   :  { %17 = vsyncpa [#allocation5], 0  ;;  %s1479_s21 = smov 0   ;;  %s1481_s22 = smov 0  }
   0x7   :  { %s1483_s23 = smov 0   ;;  %s1485_s24 = smov 0  }
   0x8 LB: > { %s1498_s25 = sadd.s32 4294967295, %s1433_s24   ;;  %p43_p0 = scmp.ne.s32.totalorder %s1425_s22, %s1421_s21  ;;  %s1433_s24 = sphi %s1485_s24, %s1813_s24   ;;  %s1429_s23 = sphi %s1483_s23, %s1812_s23   ;;  %s1425_s22 = sphi %s1481_s22, %s1811_s22   ;;  %s1421_s21 = sphi %s1479_s21, %s1810_s21  }
   0x9   : > { %p1795_p1 = scmp.eq.s32.totalorder %s1498_s25, 0  ;;  %p1020_p2 = scmp.ge.s32.totalorder %s1433_s24, 1 }
   0xa   : > { %p200_p3 = scmp.lt.s32.totalorder %s1433_s24, 7  ;;  %s1435_s28 = smov [#allocation8]  }
   0xb   : > { %p1507_p5 = por %p1795_p1, %p43_p0  ;;  %s212_s29 = sshll.u32 %s1435_s28, 4  ;;  %s213_s29 = int_to_ptr.vmem [resolvable:$true] %s212_s29 }
   0xc   : > { %p1511_p6 = pnand %p1020_p2, %p200_p3  ;;  %s1524_s7 = sadd.s32 1, %s1433_s24  }
   0xd   : > { %s1799_s26 = scalar_select %p1507_p5, 1, 0 }
   0xe   : > { %s1800_s27 = scalar_select %p1511_p6, 1, 0 }
   0xf   : > { %p1192_p7 = pneg %p1511_p6  ;;  %s30_s8 = sadd.s32 1, %s1429_s23 }
  0x10   : > { %s27_s9 = ssub.s32 %s1433_s24, %s1524_s7  ;;  %s1273_s12 = scalar_lea.hbm %s1793_s5, 512 }
  0x11   : > { %p1519_p8 = pnand %p1192_p7, %p1795_p1  ;;  %p1274_p9 = scmp.ne.s32.totalorder %s1793_s5, %s1273_s12 }
  0x12   : > { %p1280_p13 = scmp.lt.u32.totalorder %s1273_s12, %s1793_s5 }
  0x13   : > { %p1275_p10 = pneg %p1519_p8 }
  0x15   : > { %p1276_p11 = pnand %p1275_p10, %p1274_p9 }
  0x17   : > { %p1277_p12 = pneg %p1276_p11 }
  0x19   : > { %p1282_p0 = pnand %p1280_p13, %p1277_p12 }
  0x1b   : > { %1285 = shalt.err (!%p1282_p0)
}
  0x1c   : > { %s1286_s17 = scalar_lea.vmem %s213_s29, 512  ;;  %p1294_p4 = scmp.lt.s32.totalorder %s213_s29, %s213_s29 }
  0x1d   : > { %p1287_p2 = scmp.ne.s32.totalorder %s213_s29, %s1286_s17  ;;  %p1295_p1 = scmp.lt.s32.totalorder %s1286_s17, %s1286_s17 }
  0x1f   : > { %p1289_p3 = pnand %p1287_p2, %p1275_p10  ;;  %p1296_p5 = por %p1295_p1, %p1294_p4 }
  0x21   : > { %p1290_p7 = pneg %p1289_p3 }
  0x23   : > { %p1297_p6 = pnand %p1296_p5, %p1290_p7 }
  0x25   : > { %1300 = shalt.err (!%p1297_p6)
}
  0x26   : > { %s1436_s18 = smov 64   ;;  %s1437_s19 = smov 4  }
  0x27   : > { %1195 = dma.hbm_to_vmem [thread:$0]  (!%p1519_p8), %s1793_s5, 512, %s213_s29, [#allocation7], %s1436_s18, %s1436_s18, %s1437_s19  }
  0x28   : > { %p28_p1 = scmp.eq.s32.totalorder %s27_s9, 0  ;;  %p37_p4 = scmp.ne.s32.totalorder %s1429_s23, %s1425_s22 }
  0x29   : > { %p38_p5 = scmp.eq.s32.totalorder %s1433_s24, 0  ;;  %p1204_p6 = scmp.lt.s32.totalorder %s1433_s24, 6 }
  0x2a   : > { %s1553_s28 = scalar_select %p28_p1, %s1429_s23, %s30_s8  }
  0x2b   : > { %p39_p9 = por %p38_p5, %p37_p4  ;;  %s1556_s10 = sand.u32 1, %s1429_s23  }
  0x2c   : > { %s1023_s30 = sshll.u32 %s1556_s10, 5  ;;  %s1072_s11 = sshll.u32 %s1433_s24, 9 }
  0x2d   : > { %s1802_s0 = sld [smem:[#allocation14_spill]]  ;;  %s230_s29 = scalar_lea.vmem [#allocation3], %s1023_s30 }
  0x2e   : > { %s237_s8 = sshll.u32 %s230_s29, 4  ;;  %p1567_p8 = pnand %p1204_p6, %p39_p9  ;;  %s1565_s8 = int_to_ptr.vmem [resolvable:$true] %s237_s8 }
  0x2f   : > { %s263_s15 = sand.u32 1, %s1433_s24   ;;  %s1026_s16 = sshll.u32 %s1556_s10, 6 }
  0x30   : > { %s227_s17 = scalar_lea.sflag [#allocation4], %s1556_s10  ;;  %p1303_p11 = pneg %p1567_p8 }
  0x33   : > { %s1563_s14 = scalar_lea.hbm %s1802_s0, %s1072_s11  ;;  %s1306_s11 = scalar_lea.hbm %s1802_s0, 3072 }
  0x34   : > { %s1301_s20 = scalar_lea.hbm %s1563_s14, 512  ;;  %p1307_p0 = scmp.lt.u32.totalorder %s1563_s14, %s1802_s0 }
  0x35   : > { %p1302_p10 = scmp.ne.s32.totalorder %s1563_s14, %s1301_s20  ;;  %p1308_p2 = scmp.lt.u32.totalorder %s1306_s11, %s1301_s20 }
  0x36   : > { %p1310_p7 = scmp.lt.u32.totalorder %s1301_s20, %s1563_s14 }
  0x37   : > { %p1304_p12 = pnand %p1303_p11, %p1302_p10  ;;  %p1309_p3 = por %p1308_p2, %p1307_p0 }
  0x39   : > { %p1305_p13 = pneg %p1304_p12  ;;  %p1311_p1 = por %p1310_p7, %p1309_p3 }
  0x3b   : > { %p1312_p4 = pnand %p1311_p1, %p1305_p13 }
  0x3d   : > { %1315 = shalt.err (!%p1312_p4)
}
  0x3e   : > { %s1316_s29 = scalar_lea.vmem %s1565_s8, 512  ;;  %s1438_s21 = smov [#allocation3]  }
  0x3f   : > { %p1317_p5 = scmp.ne.s32.totalorder %s1565_s8, %s1316_s29  ;;  %s1321_s30 = sshll.u32 %s1438_s21, 4  ;;  %s1322_s30 = int_to_ptr.vmem [resolvable:$false] %s1321_s30 }
  0x40   : > { %s1323_s12 = scalar_lea.vmem %s1322_s30, 1024  ;;  %p1324_p10 = scmp.lt.s32.totalorder %s1565_s8, %s1322_s30 }
  0x41   : > { %p1319_p6 = pnand %p1317_p5, %p1303_p11  ;;  %p1325_p12 = scmp.lt.s32.totalorder %s1323_s12, %s1316_s29 }
  0x43   : > { %p1320_p9 = pneg %p1319_p6  ;;  %p1326_p0 = por %p1325_p12, %p1324_p10 }
  0x45   : > { %p1327_p2 = pnand %p1326_p0, %p1320_p9 }
  0x47   : > { %1330 = shalt.err (!%p1327_p2)
}
  0x48   : > { %1199 = dma.hbm_to_vmem [thread:$0]  (!%p1567_p8), %s1563_s14, 512, %s1565_s8, %s227_s17, %s1436_s18, %s1436_s18, %s1437_s19  }
  0x49   : > { %s1073_s20 = sshll.u32 %s1433_s24, 10  ;;  %s267_s21 = scalar_lea.vmem [#allocation6], %s1026_s16 }
  0x4a   : > { %s1608_s29 = scalar_lea.hbm %s1791_s3, %s1073_s20  ;;  %s274_s30 = sshll.u32 %s267_s21, 4  ;;  %s1612_s30 = int_to_ptr.vmem [resolvable:$true] %s274_s30 }
  0x4b   : > { %s1616_s12 = scalar_lea.sflag [#allocation7], %s263_s15  ;;  %s1331_s0 = scalar_lea.hbm %s1608_s29, 1024 }
  0x4c   : > { %p1332_p13 = scmp.ne.s32.totalorder %s1608_s29, %s1331_s0  ;;  %s1336_s10 = scalar_lea.hbm %s1791_s3, 6144 }
  0x4d   : > { %p1337_p1 = scmp.lt.u32.totalorder %s1608_s29, %s1791_s3  ;;  %p1338_p4 = scmp.lt.u32.totalorder %s1336_s10, %s1331_s0 }
  0x4e   : > { %p1334_p3 = pnand %p1332_p13, %p1303_p11  ;;  %p1340_p6 = scmp.lt.u32.totalorder %s1331_s0, %s1608_s29 }
  0x4f   : > { %p1339_p5 = por %p1338_p4, %p1337_p1 }
  0x50   : > { %p1335_p7 = pneg %p1334_p3 }
  0x51   : > { %p1341_p9 = por %p1340_p6, %p1339_p5 }
  0x53   : > { %p1342_p10 = pnand %p1341_p9, %p1335_p7 }
  0x55   : > { %1345 = shalt.err (!%p1342_p10)
}
  0x56   : > { %s1346_s24 = scalar_lea.vmem %s1612_s30, 1024  ;;  %s1439_s15 = smov [#allocation6]  }
  0x57   : > { %p1347_p12 = scmp.ne.s32.totalorder %s1612_s30, %s1346_s24  ;;  %s1351_s16 = sshll.u32 %s1439_s15, 4  ;;  %s1352_s16 = int_to_ptr.vmem [resolvable:$false] %s1351_s16 }
  0x58   : > { %s1353_s11 = scalar_lea.vmem %s1352_s16, 2048  ;;  %p1354_p13 = scmp.lt.s32.totalorder %s1612_s30, %s1352_s16 }
  0x59   : > { %p1349_p0 = pnand %p1347_p12, %p1303_p11  ;;  %p1355_p3 = scmp.lt.s32.totalorder %s1353_s11, %s1346_s24 }
  0x5b   : > { %p1350_p2 = pneg %p1349_p0  ;;  %p1356_p1 = por %p1355_p3, %p1354_p13 }
  0x5d   : > { %p1357_p4 = pnand %p1356_p1, %p1350_p2 }
  0x5f   : > { %1360 = shalt.err (!%p1357_p4)
}
  0x60   : > { %1202 = dma.hbm_to_vmem [thread:$0]  (!%p1567_p8), %s1608_s29, 1024, %s1612_s30, %s1616_s12, %s1436_s18, %s1436_s18, %s1437_s19  }
  0x61   : > { %p1804_p11 = scmp.ne.s32.totalorder %s1800_s27, 0 }
  0x62   : > { %s294_s0 = sand.u32 (!%p1804_p11), 1, %s1425_s22   ;;  %p1805_p7 = scmp.ne.s32.totalorder (!%p1804_p11), %s1799_s26, 0 }
  0x63   : > { %292 = sbr.rel (%p1804_p11) target bundleno = 634 (0x27a), region = 44  ;;  %s1030_s13 = sshll.u32 (!%p1804_p11), %s294_s0, 5 }
  0x64   : > { %s295_s21 = scalar_lea.sflag (!%p1804_p11), [#allocation4], %s294_s0  ;;  %s1648_s14 = scalar_lea.vmem (!%p1804_p11), [#allocation3], %s1030_s13 }
  0x6a   : > { %1404 = dma.done.wait (%p1805_p7), %s295_s21, 512  }
  0x6b   : > { %1406 = vsyncadd (%p1805_p7), %s295_s21, 4294966784  ;;  %s303_s9 = sand.u32 1, %s1498_s25   ;;  %s1031_s8 = sshll.u32 %s294_s0, 6 }
  0x6c   : > { %s304_s18 = scalar_lea.sflag [#allocation7], %s303_s9  ;;  %s1655_s19 = scalar_lea.vmem [#allocation6], %s1031_s8 }
  0x6d   : > { %1408 = dma.done.wait (%p1805_p7), %s304_s18, 1024  }
  0x6e   : > { %1410 = vsyncadd (%p1805_p7), %s304_s18, 4294966272  ;;  %p1806_p8 = scmp.eq.s32.totalorder %s1498_s25, 0 }
  0x70   : > { %1412 = dma.done.wait (%p1806_p8), [#allocation7], 512   ;;  %p1807_p5 = pmov %p1806_p8 }
  0x71   : > { %p353_p6 = scmp.lt.s32.totalorder %s1498_s25, 5  ;;  %p1808_p9 = scmp.ne.s32.totalorder %s1498_s25, 0 }
  0x72   : > { %1414 = vsyncadd (%p1807_p5), [#allocation7], 4294966784  ;;  %v1247_v0 = vld [vmem:[#allocation8] sm:$0xff] (!%p1808_p9)   ;;  %v1248_v1 = vld [vmem:[#allocation8 + $0x8] sm:$0xff] (!%p1808_p9)  }
  0x73   : > { %s1669_s27 = scalar_select %p353_p6, %s1498_s25, 5 }
  0x74   : > { %370 = sbr.rel (%p1808_p9) target bundleno = 123 (0x7b), region = 60  ;;  %403 = vst [vmem:[#allocation2] sm:$0xff] (!%p1808_p9), %v1247_v0  ;;  %v1249_v2 = vld [vmem:[#allocation8 + $0x10] sm:$0xff] (!%p1808_p9)   ;;  %404 = vst [vmem:[#allocation2 + $0x8] sm:$0xff] (!%p1808_p9), %v1248_v1  ;;  %v1250_v3 = vld [vmem:[#allocation8 + $0x18] sm:$0xff] (!%p1808_p9)  }
  0x75   : > { %s1074_s29 = sshll.u32 %s1669_s27, 6  ;;  %s365_s26 = scalar_lea.vmem %s1792_s4, %s1669_s27  ;;  %405 = vst [vmem:[#allocation2 + $0x10] sm:$0xff] (!%p1808_p9), %v1249_v2  ;;  %406 = vst [vmem:[#allocation2 + $0x18] sm:$0xff] (!%p1808_p9), %v1250_v3 }
  0x76   : > { %s1679_s20 = scalar_lea.vmem %s1789_s1, %s1074_s29  ;;  %s1684_s16 = scalar_lea.vmem %s1790_s2, %s1074_s29 }
  0x7b PF: > { %v407_v4 = vld [vmem:[#allocation2] sm:$0xff]  ;;  %v1688_v5 = vld [vmem:[#allocation2 + $0x8] sm:$0xff]  ;;  %vm439_vm0 = vcmask 523264   ;;  %v1440_v6 = vmov 0   ;;  %v519_v10 = vld [vmem:[%s1679_s20 + $0x10] sm:$0xff]  ;;  %p850_p10 = scmp.gt.s32.totalorder %s1498_s25, 0 }
  0x7c   : > { %1108 = vmatprep.subr.bf16.mxu0 %v407_v4  ;;  %1251 = vset.pattern.permute.xlu0 %v1440_v6  ;;  %v1253_v7 = vld [vmem:[%s1648_s14] sm:$0xff]   ;;  %v1692_v8 = vld [vmem:[#allocation2 + $0x10] sm:$0xff]  ;;  %v1699_v11 = vld [vmem:[#allocation2 + $0x18] sm:$0xff] }
  0x7d   : > { %1109 = vmatpush3.bf16.msra.mxu0 %v407_v4  ;;  %1252 = vset.pattern.permute.xlu1 %v1440_v6  ;;  %v517_v9 = vld [vmem:[%s1679_s20] sm:$0xff]  ;;  %v518_v12 = vld [vmem:[%s1679_s20 + $0x8] sm:$0xff]  ;;  %v520_v13 = vld [vmem:[%s1679_s20 + $0x18] sm:$0xff]  ;;  %p1738_p12 = pnand %p850_p10, %p353_p6 }
  0x7e   : > { %1110 = vmatprep.subr.bf16.mxu0 %v1688_v5  ;;  %1164 = vmatprep.mubr.bf16.mxu1 %v407_v4  ;;  %v1257_v14 = vld [vmem:[%s1684_s16] sm:$0xff]   ;;  %v522_v16 = vld [vmem:[%s1679_s20 + $0x28] sm:$0xff]  ;;  %v1255_v19 = vld [vmem:[%s1648_s14 + $0x10] sm:$0xff]  }
  0x7f   : > { %1116 = vmatprep.mubr.msk.bf16.mxu0 %vm439_vm0, %v1253_v7  ;;  %527 = vperm.xlu0 %1251, %v517_v9   ;;  %v521_v15 = vld [vmem:[%s1679_s20 + $0x20] sm:$0xff]  ;;  %v1254_v17 = vld [vmem:[%s1648_s14 + $0x8] sm:$0xff]   ;;  %v523_v21 = vld [vmem:[%s1679_s20 + $0x30] sm:$0xff] }
  0x80   : > { %537 = vperm.xlu1 %1252, %v519_v10   ;;  %v1258_v18 = vld [vmem:[%s1655_s19] sm:$0xff]   ;;  %1148 = vmatprep.subr.bf16.mxu1 %v1257_v14  ;;  %v1259_v20 = vld [vmem:[%s1684_s16 + $0x8] sm:$0xff]   ;;  %v524_v22 = vld [vmem:[%s1679_s20 + $0x38] sm:$0xff] }
  0x81   : > { %1111 = vmatpush3.bf16.msra.mxu0 %v1688_v5  ;;  %1149 = vmatpush3.bf16.msra.mxu1 %v1257_v14  ;;  %v1260_v23 = vld [vmem:[%s1655_s19 + $0x8] sm:$0xff]   ;;  %v1261_v24 = vld [vmem:[%s1684_s16 + $0x10] sm:$0xff]   ;;  %v1263_v25 = vld [vmem:[%s1684_s16 + $0x18] sm:$0xff]  }
  0x82   : > { %1112 = vmatprep.subr.bf16.mxu0 %v1692_v8  ;;  %1150 = vmatprep.subr.bf16.mxu1 %v1259_v20  ;;  %v1256_v26 = vld [vmem:[%s1648_s14 + $0x18] sm:$0xff]   ;;  %v1262_v27 = vld [vmem:[%s1655_s19 + $0x10] sm:$0xff]   ;;  %v1265_v28 = vld [vmem:[%s1684_s16 + $0x20] sm:$0xff]  }
  0x83   : > { %532 = vperm.xlu0 %1251, %v518_v12   ;;  %v1264_v29 = vld [vmem:[%s1655_s19 + $0x18] sm:$0xff]   ;;  %v1267_v30 = vld [vmem:[%s1684_s16 + $0x28] sm:$0xff]   ;;  %v1266_v31 = vld [vmem:[%s1655_s19 + $0x20] sm:$0xff]  }
  0x84   : > { %542 = vperm.xlu1 %1252, %v520_v13   ;;  %v1269_v32 = vld [vmem:[%s1684_s16 + $0x30] sm:$0xff]   ;;  %v1268_v33 = vld [vmem:[%s1655_s19 + $0x28] sm:$0xff]   ;;  %v1271_v35 = vld [vmem:[%s1684_s16 + $0x38] sm:$0xff]  }
  0x85   : > { %1113 = vmatpush3.bf16.msra.mxu0 %v1692_v8  ;;  %1151 = vmatpush3.bf16.msra.mxu1 %v1259_v20  ;;  %v1270_v34 = vld [vmem:[%s1655_s19 + $0x30] sm:$0xff]   ;;  %v1272_v36 = vld [vmem:[%s1655_s19 + $0x38] sm:$0xff]   ;;  %v1066_v10 = vld [vmem:[%s365_s26] ss:$0 sm:$0xff] }
  0x86   : > { %1114 = vmatprep.subr.bf16.mxu0 %v1699_v11  ;;  %1152 = vmatprep.subr.bf16.mxu1 %v1261_v24 }
  0x87   : > { %547 = vperm.xlu0 %1251, %v521_v15  }
  0x88   : > { %552 = vperm.xlu1 %1252, %v522_v16  }
  0x89   : > { %1115 = vmatpush3.bf16.msra.mxu0 %v1699_v11  ;;  %1153 = vmatpush3.bf16.msra.mxu1 %v1261_v24 }
  0x8a   : > { %1124 = vmatprep.subr.bf16.mxu0 %v1258_v18  ;;  %1154 = vmatprep.subr.bf16.mxu1 %v1263_v25 }
  0x8b   : > { %557 = vperm.xlu0 %1251, %v523_v21  }
  0x8c   : > { %1117 = vmatmul.mubr.msk.bf16.vlgmr.msra.gmra.mrb[0].mxu0 %vm439_vm0, %v1254_v17  ;;  %562 = vperm.xlu1 %1252, %v524_v22  }
  0x8d   : > { %1120 = vmatprep.mubr.msk.bf16.mxu0 %vm439_vm0, %v1255_v19  ;;  %1125 = vmatpush3.bf16.msra.mxu0 %v1258_v18 }
  0x8e   : > { %1126 = vmatprep.subr.bf16.mxu0 %v1260_v23  ;;  %1155 = vmatpush3.bf16.msra.mxu1 %v1263_v25 }
  0x8f   : > { %1156 = vmatprep.subr.bf16.mxu1 %v1265_v28 }
  0x91   : > { %1127 = vmatpush3.bf16.msra.mxu0 %v1260_v23 }
  0x92   : > { %1128 = vmatprep.subr.bf16.mxu0 %v1262_v27  ;;  %1157 = vmatpush3.bf16.msra.mxu1 %v1265_v28 }
  0x93   : > { %1158 = vmatprep.subr.bf16.mxu1 %v1267_v30 }
  0x94   : > { %1121 = vmatmul.mubr.msk.bf16.gmra.mrb[4].mxu0 %vm439_vm0, %v1256_v26 }
  0x95   : > { %1129 = vmatpush3.bf16.msra.mxu0 %v1262_v27 }
  0x96   : > { %1130 = vmatprep.subr.bf16.mxu0 %v1264_v29  ;;  %1159 = vmatpush3.bf16.msra.mxu1 %v1267_v30 }
  0x97   : > { %1160 = vmatprep.subr.bf16.mxu1 %v1269_v32 }
  0x99   : > { %1131 = vmatpush3.bf16.msra.mxu0 %v1264_v29 }
  0x9a   : > { %1132 = vmatprep.subr.bf16.mxu0 %v1266_v31  ;;  %1161 = vmatpush3.bf16.msra.mxu1 %v1269_v32 }
  0x9b   : > { %1162 = vmatprep.subr.bf16.mxu1 %v1271_v35 }
  0x9d   : > { %1133 = vmatpush3.bf16.msra.mxu0 %v1266_v31 }
  0x9e   : > { %1134 = vmatprep.subr.bf16.mxu0 %v1268_v33  ;;  %1163 = vmatpush3.bf16.msra.mxu1 %v1271_v35 }
  0xa1   : > { %1135 = vmatpush3.bf16.msra.mxu0 %v1268_v33  ;;  %1165 = vmatmul.mubr.bf16.vlgmr.msra.gmra.mrb[0].mxu1 %v1688_v5 }
  0xa2   : > { %1136 = vmatprep.subr.bf16.mxu0 %v1270_v34  ;;  %1168 = vmatprep.mubr.bf16.mxu1 %v1692_v8 }
  0xa5   : > { %1137 = vmatpush3.bf16.msra.mxu0 %v1270_v34 }
  0xa6   : > { %1138 = vmatprep.subr.bf16.mxu0 %v1272_v36 }
  0xa9   : > { %1139 = vmatpush3.bf16.msra.mxu0 %v1272_v36  ;;  %1169 = vmatmul.mubr.bf16.gmra.mrb[4].mxu1 %v1699_v11 }
  0xfe   : > { %v528_v37 = vpop.permute.xlu0 %527 }
  0xff   : > { %v538_v38 = vpop.permute.xlu1 %537 }
 0x102   : > { %v533_v39 = vpop.permute.xlu0 %532 }
 0x103   : > { %v543_v40 = vpop.permute.xlu1 %542 }
 0x106   : > { %v548_v44 = vpop.permute.xlu0 %547 }
 0x107   : > { %v553_v48 = vpop.permute.xlu1 %552 }
 0x10a   : > { %v558_v54 = vpop.permute.xlu0 %557 }
 0x10b   : > { %v563_v56 = vpop.permute.xlu1 %562 }
 0x15f   : > { %v1118_v41 = vpop.f32.mrb[0].mxu0 }
 0x160   : > { %v486_v42 = vpop.f32.mrb[1].mxu0  ;;  %v567_v45 = vmul.f32 %v1118_v41, %v538_v38 }
 0x161   : > { %v1119_v43 = vpop.f32.mrb[2].mxu0  ;;  %v565_v49 = vmul.f32 %v528_v37, %v486_v42 }
 0x162   : > { %v568_v46 = vmul.f32 %v1119_v43, %v543_v40  ;;  %v489_v47 = vpop.f32.mrb[3].mxu0 }
 0x163   : > { %v566_v50 = vmul.f32 %v533_v39, %v489_v47 }
 0x164   : > { %v590_v51 = vpack.c.bf16 %v568_v46, %v567_v45 }
 0x165   : > { %v589_v52 = vpack.c.bf16 %v566_v50, %v565_v49 }
 0x167   : > { %v1122_v53 = vpop.f32.mrb[4].mxu0  ;;  %1140 = vmatprep.mubr.bf16.mxu0 %v589_v52 }
 0x168   : > { %v502_v55 = vpop.f32.mrb[5].mxu0  ;;  %1141 = vmatmul.mubr.bf16.vlgmr.msra.gmra.mrb[8].mxu0 %v590_v51  ;;  %v571_v58 = vmul.f32 %v1122_v53, %v558_v54 }
 0x169   : > { %v1123_v57 = vpop.f32.mrb[6].mxu0  ;;  %v569_v61 = vmul.f32 %v548_v44, %v502_v55 }
 0x16a   : > { %v572_v59 = vmul.f32 %v1123_v57, %v563_v56  ;;  %v505_v60 = vpop.f32.mrb[7].mxu0 }
 0x16b   : > { %v570_v62 = vmul.f32 %v553_v48, %v505_v60 }
 0x16c   : > { %v592_v63 = vpack.c.bf16 %v572_v59, %v571_v58 }
 0x16d   : > { %v591_v0 = vpack.c.bf16 %v570_v62, %v569_v61 }
 0x16f   : > { %1144 = vmatprep.mubr.bf16.mxu0 %v591_v0 }
 0x170   : > { %1145 = vmatmul.mubr.bf16.gmra.mrb[12].mxu0 %v592_v63 }
 0x174   : > { %v1166_v1 = vpop.f32.mrb[0].mxu1 }
 0x175   : > { %v804_v2 = vpop.f32.mrb[1].mxu1 }
 0x176   : > { %v1167_v3 = vpop.f32.mrb[2].mxu1 }
 0x177   : > { %v807_v4 = vpop.f32.mrb[3].mxu1 }
 0x17c   : > { %v1170_v5 = vpop.f32.mrb[4].mxu1 }
 0x17d   : > { %v820_v6 = vpop.f32.mrb[5].mxu1 }
 0x17e   : > { %v1171_v7 = vpop.f32.mrb[6].mxu1 }
 0x17f   : > { %v823_v8 = vpop.f32.mrb[7].mxu1 }
 0x23b   : > { %v1142_v9 = vpop.f32.mrb[8].mxu0 }
 0x23c   : > { %v813_v11 = vadd.f32 %v1166_v1, %v1142_v9  ;;  %v691_v12 = vpop.f32.mrb[9].mxu0 }
 0x23d   : > { %v805_v13 = vadd.f32 %v804_v2, %v691_v12  ;;  %v1143_v14 = vpop.f32.mrb[10].mxu0 }
 0x23e   : > { %v844_v15 = vadd.f32 %v1066_v10, %v813_v11  ;;  %v816_v16 = vadd.f32 %v1167_v3, %v1143_v14  ;;  %v694_v17 = vpop.f32.mrb[11].mxu0 }
 0x23f   : > { %v842_v18 = vadd.f32 %v1066_v10, %v805_v13  ;;  %v808_v19 = vadd.f32 %v807_v4, %v694_v17 }
 0x240   : > { %v845_v20 = vadd.f32 %v1066_v10, %v816_v16  ;;  %v858_v36 = vmax.f32 (!%p1738_p12), %v844_v15, 0.0 }
 0x241   : > { %v843_v21 = vadd.f32 %v1066_v10, %v808_v19  ;;  %v856_v34 = vmax.f32 (!%p1738_p12), %v842_v18, 0.0 }
 0x242   : > { %v859_v37 = vmax.f32 (!%p1738_p12), %v845_v20, 0.0 }
 0x243   : > { %v1146_v22 = vpop.f32.mrb[12].mxu0  ;;  %855 = sbr.rel (%p1738_p12) target bundleno = 592 (0x250), region = 64  ;;  %v857_v35 = vmax.f32 (!%p1738_p12), %v843_v21, 0.0 }
 0x244   : > { %v829_v23 = vadd.f32 %v1170_v5, %v1146_v22  ;;  %v707_v24 = vpop.f32.mrb[13].mxu0  ;;  %v865_v43 = vpack.c.bf16 (!%p1738_p12), %v859_v37, %v858_v36 }
 0x245   : > { %v821_v25 = vadd.f32 %v820_v6, %v707_v24  ;;  %v1147_v26 = vpop.f32.mrb[14].mxu0  ;;  %v864_v42 = vpack.c.bf16 (!%p1738_p12), %v857_v35, %v856_v34 }
 0x246   : > { %v848_v27 = vadd.f32 %v1066_v10, %v829_v23  ;;  %v832_v28 = vadd.f32 %v1171_v7, %v1147_v26  ;;  %v710_v29 = vpop.f32.mrb[15].mxu0  ;;  %869 = vst [vmem:[#allocation2 + $0x8] sm:$0xff] (!%p1738_p12), %v865_v43 }
 0x247   : > { %v846_v30 = vadd.f32 %v1066_v10, %v821_v25  ;;  %v824_v31 = vadd.f32 %v823_v8, %v710_v29  ;;  %868 = vst [vmem:[#allocation2] sm:$0xff] (!%p1738_p12), %v864_v42 }
 0x248   : > { %v849_v32 = vadd.f32 %v1066_v10, %v832_v28  ;;  %v862_v40 = vmax.f32 (!%p1738_p12), %v848_v27, 0.0 }
 0x249   : > { %v847_v33 = vadd.f32 %v1066_v10, %v824_v31  ;;  %v860_v38 = vmax.f32 (!%p1738_p12), %v846_v30, 0.0 }
 0x24a   : > { %v863_v41 = vmax.f32 %v849_v32, 0.0 }
 0x24b   : > { %v861_v39 = vmax.f32 %v847_v33, 0.0 }
 0x24c   : > { %v867_v45 = vpack.c.bf16 %v863_v41, %v862_v40 }
 0x24d   : > { %v866_v44 = vpack.c.bf16 %v861_v39, %v860_v38 }
 0x24e   : > { %871 = vst [vmem:[#allocation2 + $0x18] sm:$0xff] %v867_v45 }
 0x24f   : > { %870 = vst [vmem:[#allocation2 + $0x10] sm:$0xff] %v866_v44 }
 0x250 PF: > { %874 = sbr.rel (!%p1738_p12) target bundleno = 599 (0x257), region = 68  ;;  %v875_v46 = vpack.c.bf16 (%p1738_p12), %v843_v21, %v842_v18  ;;  %v876_v47 = vpack.c.bf16 (%p1738_p12), %v845_v20, %v844_v15  ;;  %v877_v48 = vpack.c.bf16 (%p1738_p12), %v847_v33, %v846_v30  ;;  %v878_v49 = vpack.c.bf16 (%p1738_p12), %v849_v32, %v848_v27 }
 0x252   : > { %879 = vst [vmem:[#allocation2] sm:$0xff] (%p1738_p12), %v875_v46  ;;  %880 = vst [vmem:[#allocation2 + $0x8] sm:$0xff] (%p1738_p12), %v876_v47 }
 0x253   : > { %881 = vst [vmem:[#allocation2 + $0x10] sm:$0xff] (%p1738_p12), %v877_v48  ;;  %882 = vst [vmem:[#allocation2 + $0x18] sm:$0xff] (%p1738_p12), %v878_v49 }
 0x257 PF: > { %p1067_p0 = scmp.ne.s32.totalorder %s1498_s25, 5 }
 0x258   : > { %887 = vst [vmem:[#allocation9] sm:$0xff] (!%p1067_p0), %v842_v18  ;;  %888 = vst [vmem:[#allocation9 + $0x8] sm:$0xff] (!%p1067_p0), %v843_v21 }
 0x259   : > { %886 = sbr.rel (%p1067_p0) target bundleno = 608 (0x260), region = 72  ;;  %889 = vst [vmem:[#allocation9 + $0x10] sm:$0xff] (!%p1067_p0), %v844_v15  ;;  %890 = vst [vmem:[#allocation9 + $0x18] sm:$0xff] (!%p1067_p0), %v845_v20 }
 0x25a   : > { %891 = vst [vmem:[#allocation9 + $0x20] sm:$0xff] (!%p1067_p0), %v846_v30  ;;  %892 = vst [vmem:[#allocation9 + $0x28] sm:$0xff] (!%p1067_p0), %v847_v33 }
 0x25b   : > { %893 = vst [vmem:[#allocation9 + $0x30] sm:$0xff] (!%p1067_p0), %v848_v27  ;;  %894 = vst [vmem:[#allocation9 + $0x38] sm:$0xff] (!%p1067_p0), %v849_v32 }
 0x260 PF: > { %p1206_p2 = scmp.eq.s32.totalorder %s1498_s25, 5  ;;  %s1441_s21 = smov [#allocation9]  }
 0x261   : > { %s901_s14 = sshll.u32 %s1441_s21, 4  ;;  %s902_s14 = int_to_ptr.vmem [resolvable:$true] %s901_s14 }
 0x262   : > { %s1361_s9 = scalar_lea.vmem %s902_s14, 1024  ;;  %p1368_p4 = scmp.lt.s32.totalorder %s902_s14, %s902_s14 }
 0x263   : > { %p1362_p13 = scmp.ne.s32.totalorder %s902_s14, %s1361_s9  ;;  %p1369_p11 = scmp.lt.s32.totalorder %s1361_s9, %s1361_s9 }
 0x265   : > { %p1363_p3 = pnand %p1362_p13, %p1206_p2  ;;  %p1370_p7 = por %p1369_p11, %p1368_p4 }
 0x267   : > { %p1364_p1 = pneg %p1363_p3 }
 0x269   : > { %p1371_p8 = pnand %p1370_p7, %p1364_p1 }
 0x26b   : > { %1374 = shalt.err (!%p1371_p8)
}
 0x26c   : > { %s1375_s19 = scalar_lea.hbm %s1794_s6, 1024 }
 0x26d   : > { %p1376_p5 = scmp.ne.s32.totalorder %s1794_s6, %s1375_s19  ;;  %p1381_p10 = scmp.lt.u32.totalorder %s1375_s19, %s1794_s6 }
 0x26f   : > { %p1377_p6 = pnand %p1376_p5, %p1206_p2 }
 0x271   : > { %p1378_p9 = pneg %p1377_p6 }
 0x273   : > { %p1383_p12 = pnand %p1381_p10, %p1378_p9 }
 0x275   : > { %1386 = shalt.err (!%p1383_p12)
}
 0x276   : > { %s1442_s26 = smov 128   ;;  %s1443_s10 = smov 8  }
 0x277   : > { %1189 = dma.vmem_to_hbm [thread:$0]  (%p1206_p2), %s902_s14, 1024, %s1794_s6, [#allocation5], %s1442_s26, %s1442_s26, %s1443_s10  }
 0x278   : > { %1416 = dma.done.wait (%p1206_p2), [#allocation5], 1024  }
 0x279   : > { %1418 = vsyncadd (%p1206_p2), [#allocation5], 4294966272 }
 0x27a PF: > { %p20_p0 = scmp.ge.s32.totalorder %s1524_s7, 8   ;;  %s1810_s21 = smov %s1425_s22 }
 0x27b   : > { %s1811_s22 = smov %s1429_s23  ;;  %s1812_s23 = smov %s1553_s28 }
 0x27c   : > { %s1813_s24 = smov %s1524_s7  ;;  %22 = sbr.rel (!%p20_p0) target bundleno = 8 (0x8), region = 123 }
 0x283   :  { %917 = vsyncpa [#allocation4], 1 }
 0x284   :  { %919 = vsyncpa [#allocation4 + $0x1], 1 }
 0x285   :  { %920 = vsyncpa [#allocation7], 1 }
 0x286   :  { %922 = vsyncpa [#allocation7 + $0x1], 1 }
 0x287   :  { %923 = vsyncpa [#allocation5], 1 }
 0x288   :  { %925 = vsyncpa [#allocation5 + $0x1], 1 }

</bundles_post_ra>
